<compile_context>
chip_gen: v7x
topology: tpu7x:2x2x1
jax: 0.10.0
libtpu: 0.0.40
codegen_flags: <defaults>
</compile_context>

<pallas_src>
from functools import partial
from typing import List

import numpy as np
import jax
import jax.numpy as jnp
from jax import lax
from jax.experimental import pallas as pl
from jax.experimental.pallas import tpu as pltpu

# ----------------------- synthetic sizes -----------------------
B = 2                    # batch
V = 256                  # number of mesh vertices (small, lane aligned)
J = 55                   # SMPL-X style kinematic tree of 55 joints
NB = 10                  # shape (beta) coefficients
NP = (J - 1) * 9         # pose-blendshape features = 486
K_BLEND = NB + NP        # per-coordinate blend contraction dim = 496
KB = 3 * K_BLEND         # fused (coordinate-major) contraction dim = 1488
JP = 64                  # joints padded to 64 for clean bf16 MXU / DMA tiling
DTYPE = jnp.float32

GENDER_TO_IDX = {"male": 0, "female": 1, "neutral": 2}

# deterministic synthetic kinematic tree (joint 0 is the root)
PARENTS = [0] + [(i - 1) // 2 for i in range(1, J)]
_DEPTH = [0] * J
for _i in range(1, J):
    _DEPTH[_i] = _DEPTH[PARENTS[_i]] + 1
LEVELS = [[i for i in range(J) if _DEPTH[i] == d] for d in range(max(_DEPTH) + 1)]


def _round_up(n: int, m: int) -> int:
    return ((n + m - 1) // m) * m


def _lane_tile(vp_pad: int) -> int:
    """Lane tile over the (padded) vertex axis; TN <= 2048 keeps the double-buffered bf16
    dirs tile (KB x TN ~ 6 MB) inside v7x's 32 MiB scoped-VMEM default (v5e/v6e have slack)."""
    return min(vp_pad, 2048)


# ----------------------- fused blend + skin Pallas kernel -----------------------
def _smpl_fused_kernel(gidx_ref, lhs_ref, dirs_ref, vt16_ref, a_ref, w_ref, out_ref):
    """One sample x one vertex lane-tile.

    lhs_ref : (16, KB) bf16   [beta|lrotmin] placed so the blend GEMM emits [x,y,z,1]x3 rows
    dirs_ref: (KB, TN) bf16   fused [shapedirs|posedirs], coordinate-major over rows
    vt16_ref: (16, TN) f32    rows 4c+k = v_template coord k, rows 4c+3 = 1, rows 12..15 = 0
    a_ref   : (16, JP) bf16   row 4c+k = A_j[c,k]; translation column has offset folded in
    w_ref   : (JP, TN) bf16   skinning weights (zero-padded joints)
    out_ref : (8,  TN) f32    rows 0..2 = skinned x,y,z; rows 3..7 = 0 (single unmasked store)
    """
    del gidx_ref
    # Blend-shapes: vph16 row 4c+k = v_posed coordinate k (k < 3), row 4c+3 = 1.0.
    vph16 = jnp.dot(lhs_ref[...], dirs_ref[...],
                    preferred_element_type=jnp.float32) + vt16_ref[...]      # (16, TN)
    # Per-vertex blended transforms: t16 row 4c+k = sum_j w_j(v) * A_j[c, k].
    t16 = jnp.dot(a_ref[...], w_ref[...],
                  preferred_element_type=jnp.float32)                        # (16, TN)
    prod = t16 * vph16                                                       # (16, TN) VPU f32
    # Constant selector: out[c] = sum_{k<4} prod[4c+k] for c < 3; rows 3..7 stay zero.
    rows = lax.broadcasted_iota(jnp.int32, (8, 16), 0)
    cols = lax.broadcasted_iota(jnp.int32, (8, 16), 1)
    sel = jnp.where((cols >= rows * 4) & (cols < rows * 4 + 4) & (rows < 3),
                    1.0, 0.0).astype(jnp.float32)
    out_ref[...] = jnp.dot(sel, prod, preferred_element_type=jnp.float32)    # (8, TN)


def smpl_fused_pallas(gender_idx, lhs16, dirs_k, vt16, a16, weightsT_k):
    """lhs16:(B,16,KB)bf16  dirs_k:(G,KB,VP)bf16  vt16:(G,16,VP)f32
       a16:(B,16,JP)bf16    weightsT_k:(G,JP,VP)bf16  ->  (B,8,VP) f32 (rows 0..2 = x,y,z)."""
    bn = lhs16.shape[0]
    kb = dirs_k.shape[1]
    jp = weightsT_k.shape[1]
    vp_pad = dirs_k.shape[2]
    tn = _lane_tile(vp_pad)
    nn = vp_pad // tn

    grid_spec = pltpu.PrefetchScalarGridSpec(
        num_scalar_prefetch=1,
        # batch innermost: gender-sorted consecutive samples hit the same gendered
        # dirs/vt/weights blocks so Pallas skips the (dominant) re-DMA.
        grid=(nn, bn),
        in_specs=[
            pl.BlockSpec((None, 16, kb), lambda n, b, g: (b, 0, 0)),
            pl.BlockSpec((None, kb, tn), lambda n, b, g: (g[b], 0, n)),
            pl.BlockSpec((None, 16, tn), lambda n, b, g: (g[b], 0, n)),
            pl.BlockSpec((None, 16, jp), lambda n, b, g: (b, 0, 0)),
            pl.BlockSpec((None, jp, tn), lambda n, b, g: (g[b], 0, n)),
        ],
        out_specs=pl.BlockSpec((None, 8, tn), lambda n, b, g: (b, 0, n)),
    )
    return pl.pallas_call(
        _smpl_fused_kernel,
        out_shape=jax.ShapeDtypeStruct((bn, 8, vp_pad), DTYPE),
        grid_spec=grid_spec,
        compiler_params=pltpu.CompilerParams(
            # Lane-tile axis may be megacore-sharded; batch stays sequential so the
            # gender-sorted DMA reuse is preserved on v7x's two TensorCores.
            dimension_semantics=("parallel", "arbitrary")),
    )(gender_idx, lhs16, dirs_k, vt16, a16, weightsT_k)


# ----------------------- plain-JAX glue (tiny sequential pieces) -----------------------
def rodrigues(r):
    """axis-angle (N, 3) -> rotation matrices (N, 3, 3)."""
    theta = jnp.sqrt(jnp.sum(r * r, axis=1, keepdims=True) + 1e-16)   # (N, 1)
    r_hat = r / theta
    cos = jnp.cos(theta)[:, :, None]
    sin = jnp.sin(theta)[:, :, None]
    z = jnp.zeros_like(r_hat[:, 0])
    m = jnp.stack([z, -r_hat[:, 2], r_hat[:, 1],
                   r_hat[:, 2], z, -r_hat[:, 0],
                   -r_hat[:, 1], r_hat[:, 0], z], axis=1).reshape(-1, 3, 3)
    outer = r_hat[:, :, None] * r_hat[:, None, :]
    eye = jnp.eye(3, dtype=r.dtype)[None]
    return cos * eye + (1.0 - cos) * outer + sin * m


def forward_kinematics(r_big, joints):
    """r_big:(Bn,J,3,3), joints:(Bn,J,3) -> relative joint transforms A:(Bn,J,4,4).

    Vectorized by tree depth: ~6 batched 4x4 matmuls instead of 54 sequential ones.
    """
    bn = r_big.shape[0]
    par = np.array(PARENTS)
    rel = joints - joints[:, par]                        # (Bn, J, 3); root row fixed below
    rel = rel.at[:, 0].set(joints[:, 0])
    bottom = jnp.broadcast_to(jnp.array([0.0, 0.0, 0.0, 1.0], dtype=r_big.dtype),
                              (bn, J, 1, 4))
    local = jnp.concatenate(
        [jnp.concatenate([r_big, rel[..., None]], axis=-1), bottom], axis=-2)  # (Bn,J,4,4)

    G = local
    for lvl in LEVELS[1:]:
        idx = np.array(lvl)
        pidx = np.array([PARENTS[i] for i in lvl])
        G = G.at[:, idx].set(jnp.matmul(G[:, pidx], local[:, idx]))

    jh = jnp.concatenate([joints, jnp.zeros((bn, J, 1), dtype=joints.dtype)], axis=2)
    t = jnp.matmul(G, jh[..., None])                                           # (Bn,J,4,1)
    packed = jnp.concatenate([jnp.zeros((bn, J, 4, 3), dtype=joints.dtype), t], axis=3)
    return G - packed


@partial(jax.jit, static_argnums=(0,))
def _smplset_forward_jit(genders, beta, pose, offset, kernel_params):
    dirs_k, vt16, weightsT_k, jreg_vt, jreg_sd = kernel_params
    bn = beta.shape[0]

    # --- static (trace-time) gender bookkeeping: sort batch by gender so consecutive grid
    #     steps reuse the same gendered parameter block (skips the dominant dirs re-DMA).
    gidx = [GENDER_TO_IDX[g] for g in genders]
    order = sorted(range(bn), key=lambda i: gidx[i])
    inv = np.argsort(np.array(order))
    order_np = np.array(order)
    g_sorted_np = np.array([gidx[i] for i in order], dtype=np.int32)

    beta_s, pose_s, off_s = beta[order_np], pose[order_np], offset[order_np]
    gender_idx = jnp.asarray(g_sorted_np)

    # --- pose features
    r_big = rodrigues(pose_s.reshape(-1, 3)).reshape(bn, J, 3, 3)
    lrotmin = (r_big[:, 1:] - jnp.eye(3, dtype=DTYPE)).reshape(bn, NP)
    bl = jnp.concatenate([beta_s, lrotmin], axis=1)                      # (bn, K_BLEND)

    # bl placed so the blend GEMM emits rows [x,y,z,1]x3 directly (bf16 cast hoisted here)
    P = np.zeros((16, 3), np.float32)
    for c in range(3):
        for k in range(3):
            P[4 * c + k, k] = 1.0
    lhs16 = (jnp.asarray(P)[None, :, :, None] * bl[:, None, None, :]).reshape(bn, 16, KB)
    lhs16 = lhs16.astype(jnp.bfloat16)

    # --- joint regression hoisted out of the kernel (precomputed per-gender factors)
    joints = jreg_vt[g_sorted_np] + jnp.einsum('bjck,bk->bjc',
                                               jreg_sd[g_sorted_np], beta_s)   # (bn, J, 3)

    # --- forward kinematics (level-vectorized plain JAX); fold offset into translations
    A = forward_kinematics(r_big, joints)                                # (bn, J, 4, 4)
    A = A.at[:, :, :3, 3].add(off_s[:, None, :])
    a12 = jnp.transpose(A[:, :, :3, :], (0, 2, 3, 1)).reshape(bn, 12, J)  # row 4c+k = A[c,k]
    a16 = jnp.zeros((bn, 16, JP), DTYPE).at[:, :12, :J].set(a12).astype(jnp.bfloat16)

    # --- fused blend-shapes + skinning (Pallas)
    out_cm = smpl_fused_pallas(gender_idx, lhs16, dirs_k, vt16, a16, weightsT_k)  # (bn,8,VP)
    out = jnp.transpose(out_cm[:, :3, :V], (0, 2, 1))                    # (bn, V, 3), sorted
    return out[inv]                                                      # original order


def smplset_forward(genders: List[str], beta, pose, offset, kernel_params):
    return _smplset_forward_jit(tuple(genders), beta, pose, offset, kernel_params)


# ----------------------- pure-JAX reference (for correctness check) -----------------------
def smplset_reference(genders, beta, pose, offset, raw_params):
    shapedirs_all, posedirs_all, vtemplate_all, jreg_all, weights_all = raw_params
    outs = []
    for i, gname in enumerate(genders):
        g = GENDER_TO_IDX[gname]
        sd, pd, vt = shapedirs_all[g], posedirs_all[g], vtemplate_all[g]
        jr, w = jreg_all[g], weights_all[g]
        b, p, off = beta[i:i + 1], pose[i:i + 1], offset[i:i + 1]

        v_shaped = jnp.tensordot(b, sd, axes=([1], [2])) + vt          # (1, V, 3)
        joint = jnp.matmul(jr, v_shaped)                               # (1, J, 3)
        r_big = rodrigues(p.reshape(-1, 3)).reshape(1, J, 3, 3)
        lrot = (r_big[:, 1:] - jnp.eye(3, dtype=DTYPE)).reshape(1, NP)
        v_posed = v_shaped + jnp.tensordot(lrot, pd, axes=([1], [2]))

        A = forward_kinematics(r_big, joint)                           # (1, J, 4, 4)
        T = jnp.tensordot(A, w, axes=([1], [1])).transpose(0, 3, 1, 2)  # (1, V, 4, 4)
        rest_h = jnp.concatenate([v_posed, jnp.ones((1, V, 1), DTYPE)], axis=2)
        v = jnp.matmul(T, rest_h.reshape(1, -1, 4, 1)).reshape(1, -1, 4)[:, :, :3]
        outs.append(v + off.reshape(1, 1, 3))
    return jnp.concatenate(outs, axis=0)


# ----------------------- main -----------------------
if __name__ == "__main__":
    key = jax.random.PRNGKey(0)
    ks = jax.random.split(key, 10)

    # deterministic synthetic "SMPL" parameters for 3 genders (male/female/neutral)
    shapedirs_all = jax.random.normal(ks[0], (3, V, 3, NB), DTYPE) * 0.03    # (g, V, 3, NB)
    posedirs_all = jax.random.normal(ks[1], (3, V, 3, NP), DTYPE) * 0.003    # (g, V, 3, NP)
    vtemplate_all = jax.random.normal(ks[2], (3, V, 3), DTYPE) * 0.1         # (g, V, 3)
    jreg_raw = jax.random.uniform(ks[3], (3, J, V), DTYPE)
    jreg_all = jreg_raw / jnp.sum(jreg_raw, axis=-1, keepdims=True)          # (g, J, V)
    w_raw = jax.random.uniform(ks[4], (3, V, J), DTYPE)
    weights_all = w_raw / jnp.sum(w_raw, axis=-1, keepdims=True)             # (g, V, J)

    # --- kernel-friendly fused layouts (vertices on lanes, padded to 128 / tile size) ---
    tn0 = _lane_tile(_round_up(V, 128))
    vp_pad = _round_up(V, tn0)          # TN always divides VP -> no divisor-search fallback

    def pad_lanes(x):
        pad = vp_pad - x.shape[-1]
        return jnp.pad(x, [(0, 0)] * (x.ndim - 1) + [(0, pad)]) if pad else x

    # fused per-coordinate blendshape matrix: row (k*K_BLEND + j) = coord-k feature-j dirs
    sd_t = jnp.transpose(shapedirs_all, (0, 2, 3, 1))          # (G, 3, NB, V)
    pd_t = jnp.transpose(posedirs_all, (0, 2, 3, 1))           # (G, 3, NP, V)
    dirs_k = jnp.concatenate([sd_t, pd_t], axis=2).reshape(3, KB, V)
    dirs_k = pad_lanes(dirs_k).astype(jnp.bfloat16)            # (G, KB, VP) bf16

    # f32 rider carrying v_template and the homogeneous 1 (rows 4c+k = vt_k, rows 4c+3 = 1)
    vt_t = jnp.transpose(vtemplate_all, (0, 2, 1))             # (G, 3, V)
    grp = jnp.concatenate([vt_t, jnp.ones((3, 1, V), DTYPE)], axis=1)        # (G, 4, V)
    vt16 = pad_lanes(jnp.concatenate([grp, grp, grp, jnp.zeros((3, 4, V), DTYPE)], axis=1))

    # skinning weights: transpose to (J, V), zero-pad joints to JP=64, bf16
    wT = jnp.pad(jnp.transpose(weights_all, (0, 2, 1)), ((0, 0), (0, JP - J), (0, 0)))
    weightsT_k = pad_lanes(wT).astype(jnp.bfloat16)            # (G, JP, VP) bf16

    # per-gender joint-regressor factors (joint regression hoisted out of the kernel)
    jreg_vt = jnp.einsum('gjv,gvc->gjc', jreg_all, vtemplate_all)            # (g, J, 3)
    jreg_sd = jnp.einsum('gjv,gvck->gjck', jreg_all, shapedirs_all)          # (g, J, 3, NB)

    kernel_params = (dirs_k, vt16, weightsT_k, jreg_vt, jreg_sd)
    raw_params = (shapedirs_all, posedirs_all, vtemplate_all, jreg_all, weights_all)

    # inputs (SMPLSet.forward signature: genders, beta, pose, offset)
    genders = ["male", "female"]
    beta = jax.random.normal(ks[5], (B, NB), DTYPE) * 0.5
    pose = jax.random.normal(ks[6], (B, J * 3), DTYPE) * 0.2
    offset = jax.random.normal(ks[7], (B, 3), DTYPE) * 0.1

    out = smplset_forward(genders, beta, pose, offset, kernel_params)
    out = jax.block_until_ready(out)
    assert out.shape == (B, V, 3), out.shape

    ref = jax.block_until_ready(smplset_reference(genders, beta, pose, offset, raw_params))
    # tolerance includes headroom for bf16-quantized blendshape / skinning / transform weights
    np.testing.assert_allclose(np.asarray(out), np.asarray(ref), rtol=2e-2, atol=5e-3)

    print("KERNEL_OK")
</pallas_src>

<mosaic_0001>
module attributes {stable_mosaic.version = 11 : i64} {
  func.func @_smpl_fused_kernel(%arg0: i32, %arg1: i32, %arg2: memref<2xi32, #tpu.memory_space<smem>>, %arg3: memref<1x16x1488xbf16, #tpu.memory_space<vmem>>, %arg4: memref<1x1488x256xbf16, #tpu.memory_space<vmem>>, %arg5: memref<1x16x256xf32, #tpu.memory_space<vmem>>, %arg6: memref<1x16x64xbf16, #tpu.memory_space<vmem>>, %arg7: memref<1x64x256xbf16, #tpu.memory_space<vmem>>, %arg8: memref<1x8x256xf32, #tpu.memory_space<vmem>>) attributes {dimension_semantics = [#tpu.dimension_semantics<parallel>, #tpu.dimension_semantics<arbitrary>], iteration_bounds = array<i64: 1, 2>, scalar_prefetch = 1 : i64, scratch_operands = 0 : i64, tpu.core_type = #tpu.core_type<tc>, window_params = [{transform_indices = @transform_0, window_bounds = array<i64: 1, 16, 1488>}, {transform_indices = @transform_1, window_bounds = array<i64: 1, 1488, 256>}, {transform_indices = @transform_2, window_bounds = array<i64: 1, 16, 256>}, {transform_indices = @transform_3, window_bounds = array<i64: 1, 16, 64>}, {transform_indices = @transform_4, window_bounds = array<i64: 1, 64, 256>}, {transform_indices = @transform_5, window_bounds = array<i64: 1, 8, 256>}]} {
    %c0 = arith.constant 0 : index
    %c0_0 = arith.constant 0 : index
    %c0_1 = arith.constant 0 : index
    %0 = vector.load %arg3[%c0, %c0_0, %c0_1] : memref<1x16x1488xbf16, #tpu.memory_space<vmem>>, vector<1x16x1488xbf16>
    %1 = vector.shape_cast %0 : vector<1x16x1488xbf16> to vector<16x1488xbf16>
    %c0_2 = arith.constant 0 : index
    %c0_3 = arith.constant 0 : index
    %c0_4 = arith.constant 0 : index
    %2 = vector.load %arg4[%c0_2, %c0_3, %c0_4] : memref<1x1488x256xbf16, #tpu.memory_space<vmem>>, vector<1x1488x256xbf16>
    %3 = vector.shape_cast %2 : vector<1x1488x256xbf16> to vector<1488x256xbf16>
    %cst = arith.constant dense<0.000000e+00> : vector<16x256xf32>
    %4 = tpu.matmul %1, %3, %cst {dimension_numbers = #tpu.dot_dimension_numbers<[1], [0], [0], [1], [0, 0, 1, 1], [], []>} : vector<16x1488xbf16>, vector<1488x256xbf16>, vector<16x256xf32> -> vector<16x256xf32>
    %c0_5 = arith.constant 0 : index
    %c0_6 = arith.constant 0 : index
    %c0_7 = arith.constant 0 : index
    %5 = vector.load %arg5[%c0_5, %c0_6, %c0_7] : memref<1x16x256xf32, #tpu.memory_space<vmem>>, vector<1x16x256xf32>
    %6 = vector.shape_cast %5 : vector<1x16x256xf32> to vector<16x256xf32>
    %7 = arith.addf %4, %6 : vector<16x256xf32>
    %c0_8 = arith.constant 0 : index
    %c0_9 = arith.constant 0 : index
    %c0_10 = arith.constant 0 : index
    %8 = vector.load %arg6[%c0_8, %c0_9, %c0_10] : memref<1x16x64xbf16, #tpu.memory_space<vmem>>, vector<1x16x64xbf16>
    %9 = vector.shape_cast %8 : vector<1x16x64xbf16> to vector<16x64xbf16>
    %c0_11 = arith.constant 0 : index
    %c0_12 = arith.constant 0 : index
    %c0_13 = arith.constant 0 : index
    %10 = vector.load %arg7[%c0_11, %c0_12, %c0_13] : memref<1x64x256xbf16, #tpu.memory_space<vmem>>, vector<1x64x256xbf16>
    %11 = vector.shape_cast %10 : vector<1x64x256xbf16> to vector<64x256xbf16>
    %cst_14 = arith.constant dense<0.000000e+00> : vector<16x256xf32>
    %12 = tpu.matmul %9, %11, %cst_14 {dimension_numbers = #tpu.dot_dimension_numbers<[1], [0], [0], [1], [0, 0, 1, 1], [], []>} : vector<16x64xbf16>, vector<64x256xbf16>, vector<16x256xf32> -> vector<16x256xf32>
    %13 = arith.mulf %12, %7 : vector<16x256xf32>
    %14 = tpu.iota {dimensions = array<i32: 0>} : vector<8x16xi32>
    %15 = tpu.iota {dimensions = array<i32: 1>} : vector<8x16xi32>
    %c4_i32 = arith.constant 4 : i32
    %16 = vector.broadcast %c4_i32 : i32 to vector<8x16xi32>
    %17 = arith.muli %14, %16 : vector<8x16xi32>
    %18 = arith.cmpi sge, %15, %17 : vector<8x16xi32>
    %c4_i32_15 = arith.constant 4 : i32
    %19 = vector.broadcast %c4_i32_15 : i32 to vector<8x16xi32>
    %20 = arith.muli %14, %19 : vector<8x16xi32>
    %c4_i32_16 = arith.constant 4 : i32
    %21 = vector.broadcast %c4_i32_16 : i32 to vector<8x16xi32>
    %22 = arith.addi %20, %21 : vector<8x16xi32>
    %23 = arith.cmpi slt, %15, %22 : vector<8x16xi32>
    %24 = arith.andi %18, %23 : vector<8x16xi1>
    %c3_i32 = arith.constant 3 : i32
    %25 = vector.broadcast %c3_i32 : i32 to vector<8x16xi32>
    %26 = arith.cmpi slt, %14, %25 : vector<8x16xi32>
    %27 = arith.andi %24, %26 : vector<8x16xi1>
    %cst_17 = arith.constant 1.000000e+00 : f32
    %cst_18 = arith.constant 0.000000e+00 : f32
    %28 = vector.broadcast %cst_17 : f32 to vector<8x16xf32>
    %29 = vector.broadcast %cst_18 : f32 to vector<8x16xf32>
    %30 = arith.select %27, %28, %29 : vector<8x16xi1>, vector<8x16xf32>
    %cst_19 = arith.constant dense<0.000000e+00> : vector<8x256xf32>
    %31 = tpu.matmul %30, %13, %cst_19 {dimension_numbers = #tpu.dot_dimension_numbers<[1], [0], [0], [1], [0, 0, 1, 1], [], []>} : vector<8x16xf32>, vector<16x256xf32>, vector<8x256xf32> -> vector<8x256xf32>
    %c0_20 = arith.constant 0 : index
    %c0_21 = arith.constant 0 : index
    %c0_22 = arith.constant 0 : index
    %32 = vector.load %arg8[%c0_20, %c0_21, %c0_22] : memref<1x8x256xf32, #tpu.memory_space<vmem>>, vector<1x8x256xf32>
    %33 = vector.shape_cast %32 : vector<1x8x256xf32> to vector<8x256xf32>
    %34 = vector.shape_cast %31 : vector<8x256xf32> to vector<1x8x256xf32>
    tpu.vector_store %arg8[%c0_20, %c0_21, %c0_22], %34 {strides = array<i32>} : memref<1x8x256xf32, #tpu.memory_space<vmem>>, vector<1x8x256xf32>,
    return
  }
  func.func @transform_0(%arg0: i32, %arg1: i32, %arg2: memref<2xi32, #tpu.memory_space<smem>>) -> (i32, i32, i32) {
    %c0_i32 = arith.constant 0 : i32
    %c0_i32_0 = arith.constant 0 : i32
    %c0_i32_1 = arith.constant 0 : i32
    return %arg1, %c0_i32, %c0_i32_0 : i32, i32, i32
  }
  func.func @transform_1(%arg0: i32, %arg1: i32, %arg2: memref<2xi32, #tpu.memory_space<smem>>) -> (i32, i32, i32) {
    %0 = arith.index_cast %arg1 : i32 to index
    %1 = memref.load %arg2[%0] : memref<2xi32, #tpu.memory_space<smem>>
    %c0_i32 = arith.constant 0 : i32
    %c0_i32_0 = arith.constant 0 : i32
    return %1, %c0_i32, %arg0 : i32, i32, i32
  }
  func.func @transform_2(%arg0: i32, %arg1: i32, %arg2: memref<2xi32, #tpu.memory_space<smem>>) -> (i32, i32, i32) {
    %0 = arith.index_cast %arg1 : i32 to index
    %1 = memref.load %arg2[%0] : memref<2xi32, #tpu.memory_space<smem>>
    %c0_i32 = arith.constant 0 : i32
    %c0_i32_0 = arith.constant 0 : i32
    return %1, %c0_i32, %arg0 : i32, i32, i32
  }
  func.func @transform_3(%arg0: i32, %arg1: i32, %arg2: memref<2xi32, #tpu.memory_space<smem>>) -> (i32, i32, i32) {
    %c0_i32 = arith.constant 0 : i32
    %c0_i32_0 = arith.constant 0 : i32
    %c0_i32_1 = arith.constant 0 : i32
    return %arg1, %c0_i32, %c0_i32_0 : i32, i32, i32
  }
  func.func @transform_4(%arg0: i32, %arg1: i32, %arg2: memref<2xi32, #tpu.memory_space<smem>>) -> (i32, i32, i32) {
    %0 = arith.index_cast %arg1 : i32 to index
    %1 = memref.load %arg2[%0] : memref<2xi32, #tpu.memory_space<smem>>
    %c0_i32 = arith.constant 0 : i32
    %c0_i32_0 = arith.constant 0 : i32
    return %1, %c0_i32, %arg0 : i32, i32, i32
  }
  func.func @transform_5(%arg0: i32, %arg1: i32, %arg2: memref<2xi32, #tpu.memory_space<smem>>) -> (i32, i32, i32) {
    %c0_i32 = arith.constant 0 : i32
    %c0_i32_0 = arith.constant 0 : i32
    return %arg1, %c0_i32, %arg0 : i32, i32, i32
  }
}

</mosaic_0001>

<bundles_post_ra>
// kernel: _smplset_forward_jit.1
= control target key start
LH: loop header
LB: loop body
LE: loop exit
PB: predicated region body
PF: predicated region fallthrough
CT: control target
= control target key end

     0   :  { %s3149_s0 = inlined_call_operand.vmem [shape: s32[2], index: 0, kind: input, shape index: {}]   ;;  %s3150_s1 = inlined_call_operand.vmem [shape: bf16[2,16,1488], index: 1, kind: input, shape index: {}]   ;;  %s3151_s2 = inlined_call_operand.vmem [shape: bf16[3,1488,256], index: 2, kind: input, shape index: {}]   ;;  %s3152_s3 = inlined_call_operand.vmem [shape: f32[3,16,256], index: 3, kind: input, shape index: {}]   ;;  %s3153_s4 = inlined_call_operand.vmem [shape: bf16[2,16,64], index: 4, kind: input, shape index: {}]   ;;  %s3154_s5 = inlined_call_operand.vmem [shape: bf16[3,64,256], index: 5, kind: input, shape index: {}]   ;;  %s3155_s6 = inlined_call_operand.vmem [shape: f32[2,8,256], index: 6, kind: output, shape index: {}]  }
   0x1   :  { %s11_s23 = sshll.u32 %s3149_s0, 4  ;;  %s12_s23 = int_to_ptr.vmem [resolvable:$true] %s11_s23 }
   0x2   :  { %s2798_s24 = scalar_lea.vmem %s12_s23, 16  ;;  %p2803_p1 = scmp.lt.s32.totalorder %s12_s23, %s12_s23 }
   0x3   :  { %p2799_p0 = scmp.ne.s32.totalorder %s12_s23, %s2798_s24  ;;  %p2804_p2 = scmp.lt.s32.totalorder %s2798_s24, %s2798_s24 }
   0x5   :  { %p2805_p3 = por %p2804_p2, %p2803_p1 }
   0x7   :  { %p2806_p4 = pnand %p2805_p3, %p2799_p0 }
   0x9   :  { %2809 = shalt.err (!%p2806_p4)  }
   0xa   :  { %s2836_s25 = smov [#allocation3]  }
   0xb   :  { %14 = dma.vmem_to_smem %s12_s23, 16, %s2836_s25, [#allocation2] }
   0xc   :  { %2822 = dma.done.wait [#allocation2], 16 }
   0xd   :  { %2823 = vsyncadd [#allocation2], 4294967280 }
   0xe   :  { %16 = sfence }
   0xf   :  { %s2877_s26 = smov 0   ;;  %s2879_s27 = smov 0  }
  0x10   :  { %s2881_s28 = smov 0  }
  0x11 LB: > { %s31_s0 = sadd.s32 1, %s2830_s27  ;;  %p2204_p5 = scmp.ge.s32.totalorder %s2834_s28, 1  ;;  %s2834_s28 = sphi %s2881_s28, %s22_s28   ;;  %s2830_s27 = sphi %s2879_s27, %s3157_s27   ;;  %s2826_s26 = sphi %s2877_s26, %s3156_s26  }
  0x12   : > { %p32_p6 = scmp.ge.s32.totalorder %s31_s0, 2  ;;  %p281_p7 = scmp.lt.s32.totalorder %s2834_s28, 3 }
  0x14   : > { %s3159_s0 = smov (%p32_p6, %s31_s0), 0  ;;  %p282_p8 = pnand %p2204_p5, %p281_p7 }
  0x15   : > { %s353_s29 = sld [smem:[#allocation3 + %s2826_s26]] (!%p282_p8)  ;;  %p348_p9 = scmp.lt.s32.totalorder (!%p282_p8), %s2826_s26, 1  ;;  %vm1596_vm0 = vcmask (!%p282_p8), 654336   ;;  %vm1913_vm1 = vcmask (!%p282_p8), 523264   ;;  %vm1976_vm7 = vcmask (!%p282_p8), 130048  }
  0x16   : > { %285 = sbr.rel (%p282_p8) target bundleno = 671 (0x29f), region = 40  ;;  %s382_s15 = sld [smem:[#allocation3 + %s2826_s26]] (!%p282_p8) }
  0x17   : > { %s365_s24 = sld [smem:[#allocation3 + %s2826_s26]] (!%p282_p8) }
  0x1b   : > { %p355_p10 = scmp.lt.s32.totalorder (!%p282_p8), %s353_s29, 2 }
  0x1c   : > { %p384_p11 = scmp.lt.s32.totalorder (!%p282_p8), %s382_s15, 2 }
  0x1d   : > { %s2900_s30 = scalar_select %p348_p9, %s2826_s26, 1 }
  0x1e   : > { %s3161_s29 = smov (!%p355_p10, %s353_s29), 2  ;;  %s3163_s15 = smov (!%p384_p11, %s382_s15), 2 }
  0x1f   : > { %s2459_s7 = smul.u32 96, %s2900_s30  ;;  %s2429_s16 = sshll.u32 %s3163_s15, 6 }
  0x20   : > { %s2460_s11 = smul.u32 1488, %s3161_s29  ;;  %s3049_s19 = scalar_lea.vmem %s3154_s5, %s2429_s16 }
  0x21   : > { %s2906_s10 = scalar_lea.vmem %s3150_s1, %s2459_s7  ;;  %s2428_s20 = sshll.u32 %s2900_s30, 3 }
  0x22   : > { %v2586_v0 = vld [vmem:[%s2906_s10 + $0x4] ss:$48 sps:$4 sm:$0xff]   ;;  %s2913_s14 = scalar_lea.vmem %s3151_s2, %s2460_s11  ;;  %s3068_s23 = scalar_lea.vmem %s3153_s4, %s2428_s20 }
  0x23   : > { %v2592_v1 = vld [vmem:[%s2906_s10 + $0x14] ss:$48 sps:$4 sm:$0xff]   ;;  %1632 = vmatprep.mubr.bf16.mxu1 %v2586_v0  ;;  %v2492_v4 = vld [vmem:[%s2913_s14] ss:$8 sps:$4 sm:$0xff]   ;;  %v2498_v8 = vld [vmem:[%s2913_s14 + $0x10] ss:$8 sps:$4 sm:$0xff]  }
  0x24   : > { %1718 = vmatprep.mubr.bf16.mxu0 %v2592_v1  ;;  %v2488_v2 = vld [vmem:[%s2913_s14 + $0x4] ss:$8 sps:$4 sm:$0xff]   ;;  %v2493_v5 = vld [vmem:[%s2913_s14 + $0x200] ss:$8 sps:$4 sm:$0xff]   ;;  %v2494_v6 = vld [vmem:[%s2913_s14 + $0x14] ss:$8 sps:$4 sm:$0xff]  }
  0x25   : > { %v2490_v3 = vld [vmem:[%s2913_s14 + $0x204] ss:$8 sps:$4 sm:$0xff]   ;;  %1600 = vmatprep.subr.bf16.mxu1 %v2488_v2  ;;  %v2496_v7 = vld [vmem:[%s2913_s14 + $0x214] ss:$8 sps:$4 sm:$0xff]   ;;  %v2499_v9 = vld [vmem:[%s2913_s14 + $0x210] ss:$8 sps:$4 sm:$0xff]  }
  0x26   : > { %1686 = vmatprep.subr.bf16.mxu0 %v2490_v3  ;;  %1601 = vmatpush1.bf16.msra.mxu1 %v2492_v4  ;;  %v2500_v10 = vld [vmem:[%s2913_s14 + $0x24] ss:$8 sps:$4 sm:$0xff]   ;;  %v2504_v12 = vld [vmem:[%s2913_s14 + $0x20] ss:$8 sps:$4 sm:$0xff]   ;;  %v2506_v14 = vld [vmem:[%s2913_s14 + $0x34] ss:$8 sps:$4 sm:$0xff]  }
  0x27   : > { %1687 = vmatpush1.bf16.msra.mxu0 %v2493_v5  ;;  %1602 = vmatprep.subr.bf16.mxu1 %v2494_v6  ;;  %v2502_v11 = vld [vmem:[%s2913_s14 + $0x224] ss:$8 sps:$4 sm:$0xff]   ;;  %v2505_v13 = vld [vmem:[%s2913_s14 + $0x220] ss:$8 sps:$4 sm:$0xff]   ;;  %v2508_v15 = vld [vmem:[%s2913_s14 + $0x234] ss:$8 sps:$4 sm:$0xff]  }
  0x28   : > { %1688 = vmatprep.subr.bf16.mxu0 %v2496_v7  ;;  %v2510_v16 = vld [vmem:[%s2913_s14 + $0x30] ss:$8 sps:$4 sm:$0xff]   ;;  %v2512_v18 = vld [vmem:[%s2913_s14 + $0x44] ss:$8 sps:$4 sm:$0xff]   ;;  %v2516_v20 = vld [vmem:[%s2913_s14 + $0x40] ss:$8 sps:$4 sm:$0xff]  }
  0x29   : > { %v2511_v17 = vld [vmem:[%s2913_s14 + $0x230] ss:$8 sps:$4 sm:$0xff]   ;;  %v2514_v19 = vld [vmem:[%s2913_s14 + $0x244] ss:$8 sps:$4 sm:$0xff]   ;;  %v2517_v21 = vld [vmem:[%s2913_s14 + $0x240] ss:$8 sps:$4 sm:$0xff]  }
  0x2a   : > { %1603 = vmatpush1.bf16.msra.mxu1 %v2498_v8  ;;  %v2518_v22 = vld [vmem:[%s2913_s14 + $0x54] ss:$8 sps:$4 sm:$0xff]   ;;  %v2522_v24 = vld [vmem:[%s2913_s14 + $0x50] ss:$8 sps:$4 sm:$0xff]   ;;  %v2524_v26 = vld [vmem:[%s2913_s14 + $0x64] ss:$8 sps:$4 sm:$0xff]  }
  0x2b   : > { %1689 = vmatpush1.bf16.msra.mxu0 %v2499_v9  ;;  %1604 = vmatprep.subr.bf16.mxu1 %v2500_v10  ;;  %v2520_v23 = vld [vmem:[%s2913_s14 + $0x254] ss:$8 sps:$4 sm:$0xff]   ;;  %v2523_v25 = vld [vmem:[%s2913_s14 + $0x250] ss:$8 sps:$4 sm:$0xff]   ;;  %v2526_v27 = vld [vmem:[%s2913_s14 + $0x264] ss:$8 sps:$4 sm:$0xff]  }
  0x2c   : > { %1690 = vmatprep.subr.bf16.mxu0 %v2502_v11  ;;  %v2528_v28 = vld [vmem:[%s2913_s14 + $0x60] ss:$8 sps:$4 sm:$0xff]   ;;  %v2530_v30 = vld [vmem:[%s2913_s14 + $0x74] ss:$8 sps:$4 sm:$0xff]   ;;  %v2534_v32 = vld [vmem:[%s2913_s14 + $0x70] ss:$8 sps:$4 sm:$0xff]  }
  0x2d   : > { %v2529_v29 = vld [vmem:[%s2913_s14 + $0x260] ss:$8 sps:$4 sm:$0xff]   ;;  %v2532_v31 = vld [vmem:[%s2913_s14 + $0x274] ss:$8 sps:$4 sm:$0xff]   ;;  %v2535_v33 = vld [vmem:[%s2913_s14 + $0x270] ss:$8 sps:$4 sm:$0xff]  }
  0x2e   : > { %1605 = vmatpush1.bf16.msra.mxu1 %v2504_v12  ;;  %v2536_v34 = vld [vmem:[%s2913_s14 + $0x84] ss:$8 sps:$4 sm:$0xff]   ;;  %v2540_v36 = vld [vmem:[%s2913_s14 + $0x80] ss:$8 sps:$4 sm:$0xff]   ;;  %v2542_v38 = vld [vmem:[%s2913_s14 + $0x94] ss:$8 sps:$4 sm:$0xff]  }
  0x2f   : > { %1691 = vmatpush1.bf16.msra.mxu0 %v2505_v13  ;;  %1606 = vmatprep.subr.bf16.mxu1 %v2506_v14  ;;  %v2538_v35 = vld [vmem:[%s2913_s14 + $0x284] ss:$8 sps:$4 sm:$0xff]   ;;  %v2541_v37 = vld [vmem:[%s2913_s14 + $0x280] ss:$8 sps:$4 sm:$0xff]   ;;  %v2544_v39 = vld [vmem:[%s2913_s14 + $0x294] ss:$8 sps:$4 sm:$0xff]  }
  0x30   : > { %1692 = vmatprep.subr.bf16.mxu0 %v2508_v15  ;;  %v2546_v40 = vld [vmem:[%s2913_s14 + $0x90] ss:$8 sps:$4 sm:$0xff]   ;;  %v2548_v42 = vld [vmem:[%s2913_s14 + $0xa4] ss:$8 sps:$4 sm:$0xff]   ;;  %v2552_v44 = vld [vmem:[%s2913_s14 + $0xa0] ss:$8 sps:$4 sm:$0xff]  }
  0x31   : > { %v2547_v41 = vld [vmem:[%s2913_s14 + $0x290] ss:$8 sps:$4 sm:$0xff]   ;;  %v2550_v43 = vld [vmem:[%s2913_s14 + $0x2a4] ss:$8 sps:$4 sm:$0xff]   ;;  %v2553_v45 = vld [vmem:[%s2913_s14 + $0x2a0] ss:$8 sps:$4 sm:$0xff]  }
  0x32   : > { %1607 = vmatpush1.bf16.msra.mxu1 %v2510_v16  ;;  %v2554_v46 = vld [vmem:[%s2913_s14 + $0xb4] ss:$8 sps:$4 sm:$0xff]   ;;  %v2558_v48 = vld [vmem:[%s2913_s14 + $0xb0] ss:$8 sps:$4 sm:$0xff]   ;;  %v2560_v50 = vld [vmem:[%s2913_s14 + $0xc4] ss:$8 sps:$4 sm:$0xff]  }
  0x33   : > { %1693 = vmatpush1.bf16.msra.mxu0 %v2511_v17  ;;  %1608 = vmatprep.subr.bf16.mxu1 %v2512_v18  ;;  %v2556_v47 = vld [vmem:[%s2913_s14 + $0x2b4] ss:$8 sps:$4 sm:$0xff]   ;;  %v2559_v49 = vld [vmem:[%s2913_s14 + $0x2b0] ss:$8 sps:$4 sm:$0xff]   ;;  %v2562_v51 = vld [vmem:[%s2913_s14 + $0x2c4] ss:$8 sps:$4 sm:$0xff]  }
  0x34   : > { %1694 = vmatprep.subr.bf16.mxu0 %v2514_v19  ;;  %v2564_v52 = vld [vmem:[%s2913_s14 + $0xc0] ss:$8 sps:$4 sm:$0xff]   ;;  %v2566_v54 = vld [vmem:[%s2913_s14 + $0xd4] ss:$8 sps:$4 sm:$0xff]   ;;  %v2570_v56 = vld [vmem:[%s2913_s14 + $0xd0] ss:$8 sps:$4 sm:$0xff]  }
  0x35   : > { %v2565_v53 = vld [vmem:[%s2913_s14 + $0x2c0] ss:$8 sps:$4 sm:$0xff]   ;;  %v2568_v55 = vld [vmem:[%s2913_s14 + $0x2d4] ss:$8 sps:$4 sm:$0xff]   ;;  %v2571_v57 = vld [vmem:[%s2913_s14 + $0x2d0] ss:$8 sps:$4 sm:$0xff]  }
  0x36   : > { %1609 = vmatpush1.bf16.msra.mxu1 %v2516_v20  ;;  %v2572_v58 = vld [vmem:[%s2913_s14 + $0xe4] ss:$8 sps:$4 sm:$0xff]   ;;  %v2576_v60 = vld [vmem:[%s2913_s14 + $0xe0] ss:$8 sps:$4 sm:$0xff]   ;;  %v2578_v62 = vld [vmem:[%s2913_s14 + $0xf4] ss:$8 sps:$4 sm:$0xff]  }
  0x37   : > { %1695 = vmatpush1.bf16.msra.mxu0 %v2517_v21  ;;  %1610 = vmatprep.subr.bf16.mxu1 %v2518_v22  ;;  %v2574_v59 = vld [vmem:[%s2913_s14 + $0x2e4] ss:$8 sps:$4 sm:$0xff]   ;;  %v2577_v61 = vld [vmem:[%s2913_s14 + $0x2e0] ss:$8 sps:$4 sm:$0xff]   ;;  %v2580_v63 = vld [vmem:[%s2913_s14 + $0x2f4] ss:$8 sps:$4 sm:$0xff]  }
  0x38   : > { %1696 = vmatprep.subr.bf16.mxu0 %v2520_v23  ;;  %v2582_v0 = vld [vmem:[%s2913_s14 + $0xf0] ss:$8 sps:$4 sm:$0xff]   ;;  %v2589_v2 = vld [vmem:[%s2913_s14 + $0x104] ss:$8 sps:$4 sm:$0xff]   ;;  %v2587_v6 = vld [vmem:[%s2913_s14 + $0x100] ss:$8 sps:$4 sm:$0xff]  }
  0x39   : > { %v2583_v1 = vld [vmem:[%s2913_s14 + $0x2f0] ss:$8 sps:$4 sm:$0xff]   ;;  %v2595_v3 = vld [vmem:[%s2913_s14 + $0x304] ss:$8 sps:$4 sm:$0xff]   ;;  %v2593_v7 = vld [vmem:[%s2913_s14 + $0x300] ss:$8 sps:$4 sm:$0xff]  }
  0x3a   : > { %1611 = vmatpush1.bf16.msra.mxu1 %v2522_v24  ;;  %v2584_v4 = vld [vmem:[%s2906_s10] ss:$48 sps:$4 sm:$0xff]   ;;  %v2598_v8 = vld [vmem:[%s2913_s14 + $0x114] ss:$8 sps:$4 sm:$0xff]   ;;  %v2604_v12 = vld [vmem:[%s2913_s14 + $0x124] ss:$8 sps:$4 sm:$0xff]  }
  0x3b   : > { %1697 = vmatpush1.bf16.msra.mxu0 %v2523_v25  ;;  %1612 = vmatprep.subr.bf16.mxu1 %v2524_v26  ;;  %v2590_v5 = vld [vmem:[%s2906_s10 + $0x10] ss:$48 sps:$4 sm:$0xff]   ;;  %v2601_v9 = vld [vmem:[%s2913_s14 + $0x314] ss:$8 sps:$4 sm:$0xff]   ;;  %v2607_v13 = vld [vmem:[%s2913_s14 + $0x324] ss:$8 sps:$4 sm:$0xff]  }
  0x3c   : > { %1698 = vmatprep.subr.bf16.mxu0 %v2526_v27  ;;  %v2596_v10 = vld [vmem:[%s2913_s14 + $0x110] ss:$8 sps:$4 sm:$0xff]   ;;  %v2602_v14 = vld [vmem:[%s2913_s14 + $0x120] ss:$8 sps:$4 sm:$0xff]   ;;  %v2610_v16 = vld [vmem:[%s2913_s14 + $0x134] ss:$8 sps:$4 sm:$0xff]  }
  0x3d   : > { %v2599_v11 = vld [vmem:[%s2913_s14 + $0x310] ss:$8 sps:$4 sm:$0xff]   ;;  %v2605_v15 = vld [vmem:[%s2913_s14 + $0x320] ss:$8 sps:$4 sm:$0xff]   ;;  %v2613_v17 = vld [vmem:[%s2913_s14 + $0x334] ss:$8 sps:$4 sm:$0xff]  }
  0x3e   : > { %1613 = vmatpush1.bf16.msra.mxu1 %v2528_v28  ;;  %v2608_v18 = vld [vmem:[%s2913_s14 + $0x130] ss:$8 sps:$4 sm:$0xff]   ;;  %v2616_v20 = vld [vmem:[%s2913_s14 + $0x144] ss:$8 sps:$4 sm:$0xff]   ;;  %v2614_v22 = vld [vmem:[%s2913_s14 + $0x140] ss:$8 sps:$4 sm:$0xff]  }
  0x3f   : > { %1699 = vmatpush1.bf16.msra.mxu0 %v2529_v29  ;;  %1614 = vmatprep.subr.bf16.mxu1 %v2530_v30  ;;  %v2611_v19 = vld [vmem:[%s2913_s14 + $0x330] ss:$8 sps:$4 sm:$0xff]   ;;  %v2619_v21 = vld [vmem:[%s2913_s14 + $0x344] ss:$8 sps:$4 sm:$0xff]   ;;  %v2617_v23 = vld [vmem:[%s2913_s14 + $0x340] ss:$8 sps:$4 sm:$0xff]  }
  0x40   : > { %1700 = vmatprep.subr.bf16.mxu0 %v2532_v31  ;;  %v2622_v24 = vld [vmem:[%s2913_s14 + $0x154] ss:$8 sps:$4 sm:$0xff]   ;;  %v2620_v26 = vld [vmem:[%s2913_s14 + $0x150] ss:$8 sps:$4 sm:$0xff]   ;;  %v2628_v28 = vld [vmem:[%s2913_s14 + $0x164] ss:$8 sps:$4 sm:$0xff]  }
  0x41   : > { %v2625_v25 = vld [vmem:[%s2913_s14 + $0x354] ss:$8 sps:$4 sm:$0xff]   ;;  %v2623_v27 = vld [vmem:[%s2913_s14 + $0x350] ss:$8 sps:$4 sm:$0xff]   ;;  %v2631_v29 = vld [vmem:[%s2913_s14 + $0x364] ss:$8 sps:$4 sm:$0xff]  }
  0x42   : > { %1615 = vmatpush1.bf16.msra.mxu1 %v2534_v32  ;;  %v2688_v30 = vld [vmem:[%s2906_s10 + $0xc] ss:$48 sps:$4 sm:$0xff]   ;;  %v2626_v32 = vld [vmem:[%s2913_s14 + $0x160] ss:$8 sps:$4 sm:$0xff]   ;;  %p367_p12 = scmp.lt.s32.totalorder %s365_s24, 2  ;;  %s2430_s26 = sshll.u32 %s2900_s30, 4 }
  0x43   : > { %1701 = vmatpush1.bf16.msra.mxu0 %v2535_v33  ;;  %1616 = vmatprep.subr.bf16.mxu1 %v2536_v34  ;;  %v2691_v31 = vld [vmem:[%s2906_s10 + $0x1c] ss:$48 sps:$4 sm:$0xff]   ;;  %v2629_v33 = vld [vmem:[%s2913_s14 + $0x360] ss:$8 sps:$4 sm:$0xff]   ;;  %s402_s11 = scalar_lea.vmem %s3155_s6, %s2430_s26 }
  0x44   : > { %1702 = vmatprep.subr.bf16.mxu0 %v2538_v35  ;;  %v2634_v34 = vld [vmem:[%s2913_s14 + $0x174] ss:$8 sps:$4 sm:$0xff]   ;;  %s3165_s24 = smov (!%p367_p12, %s365_s24), 2 }
  0x45   : > { %v2637_v35 = vld [vmem:[%s2913_s14 + $0x374] ss:$8 sps:$4 sm:$0xff]   ;;  %s2427_s25 = sshll.u32 %s3165_s24, 5 }
  0x46   : > { %1617 = vmatpush1.bf16.msra.mxu1 %v2540_v36  ;;  %v2632_v36 = vld [vmem:[%s2913_s14 + $0x170] ss:$8 sps:$4 sm:$0xff]   ;;  %s374_s8 = scalar_lea.vmem %s3152_s3, %s2427_s25 }
  0x47   : > { %1703 = vmatpush1.bf16.msra.mxu0 %v2541_v37  ;;  %1618 = vmatprep.subr.bf16.mxu1 %v2542_v38  ;;  %v2635_v37 = vld [vmem:[%s2913_s14 + $0x370] ss:$8 sps:$4 sm:$0xff]   ;;  %v2640_v38 = vld [vmem:[%s2913_s14 + $0x184] ss:$8 sps:$4 sm:$0xff]  }
  0x48   : > { %1704 = vmatprep.subr.bf16.mxu0 %v2544_v39  ;;  %v2643_v39 = vld [vmem:[%s2913_s14 + $0x384] ss:$8 sps:$4 sm:$0xff]  }
  0x4a   : > { %1619 = vmatpush1.bf16.msra.mxu1 %v2546_v40  ;;  %v2638_v40 = vld [vmem:[%s2913_s14 + $0x180] ss:$8 sps:$4 sm:$0xff]  }
  0x4b   : > { %1705 = vmatpush1.bf16.msra.mxu0 %v2547_v41  ;;  %1620 = vmatprep.subr.bf16.mxu1 %v2548_v42  ;;  %v2641_v41 = vld [vmem:[%s2913_s14 + $0x380] ss:$8 sps:$4 sm:$0xff]   ;;  %v2646_v42 = vld [vmem:[%s2913_s14 + $0x194] ss:$8 sps:$4 sm:$0xff]  }
  0x4c   : > { %1706 = vmatprep.subr.bf16.mxu0 %v2550_v43  ;;  %v2649_v43 = vld [vmem:[%s2913_s14 + $0x394] ss:$8 sps:$4 sm:$0xff]  }
  0x4e   : > { %1621 = vmatpush1.bf16.msra.mxu1 %v2552_v44  ;;  %v2644_v44 = vld [vmem:[%s2913_s14 + $0x190] ss:$8 sps:$4 sm:$0xff]  }
  0x4f   : > { %1707 = vmatpush1.bf16.msra.mxu0 %v2553_v45  ;;  %1622 = vmatprep.subr.bf16.mxu1 %v2554_v46  ;;  %v2647_v45 = vld [vmem:[%s2913_s14 + $0x390] ss:$8 sps:$4 sm:$0xff]   ;;  %v2652_v46 = vld [vmem:[%s2913_s14 + $0x1a4] ss:$8 sps:$4 sm:$0xff]  }
  0x50   : > { %1708 = vmatprep.subr.bf16.mxu0 %v2556_v47  ;;  %v2655_v47 = vld [vmem:[%s2913_s14 + $0x3a4] ss:$8 sps:$4 sm:$0xff]  }
  0x52   : > { %1623 = vmatpush1.bf16.msra.mxu1 %v2558_v48  ;;  %v2650_v48 = vld [vmem:[%s2913_s14 + $0x1a0] ss:$8 sps:$4 sm:$0xff]  }
  0x53   : > { %1709 = vmatpush1.bf16.msra.mxu0 %v2559_v49  ;;  %1624 = vmatprep.subr.bf16.mxu1 %v2560_v50  ;;  %v2653_v49 = vld [vmem:[%s2913_s14 + $0x3a0] ss:$8 sps:$4 sm:$0xff]   ;;  %v2658_v50 = vld [vmem:[%s2913_s14 + $0x1b4] ss:$8 sps:$4 sm:$0xff]  }
  0x54   : > { %1710 = vmatprep.subr.bf16.mxu0 %v2562_v51  ;;  %v2661_v51 = vld [vmem:[%s2913_s14 + $0x3b4] ss:$8 sps:$4 sm:$0xff]  }
  0x56   : > { %1625 = vmatpush1.bf16.msra.mxu1 %v2564_v52  ;;  %v2656_v52 = vld [vmem:[%s2913_s14 + $0x1b0] ss:$8 sps:$4 sm:$0xff]  }
  0x57   : > { %1711 = vmatpush1.bf16.msra.mxu0 %v2565_v53  ;;  %1626 = vmatprep.subr.bf16.mxu1 %v2566_v54  ;;  %v2659_v53 = vld [vmem:[%s2913_s14 + $0x3b0] ss:$8 sps:$4 sm:$0xff]   ;;  %v2664_v54 = vld [vmem:[%s2913_s14 + $0x1c4] ss:$8 sps:$4 sm:$0xff]  }
  0x58   : > { %1712 = vmatprep.subr.bf16.mxu0 %v2568_v55  ;;  %v2667_v55 = vld [vmem:[%s2913_s14 + $0x3c4] ss:$8 sps:$4 sm:$0xff]  }
  0x5a   : > { %1627 = vmatpush1.bf16.msra.mxu1 %v2570_v56  ;;  %v2662_v56 = vld [vmem:[%s2913_s14 + $0x1c0] ss:$8 sps:$4 sm:$0xff]  }
  0x5b   : > { %1713 = vmatpush1.bf16.msra.mxu0 %v2571_v57  ;;  %1628 = vmatprep.subr.bf16.mxu1 %v2572_v58  ;;  %v2665_v57 = vld [vmem:[%s2913_s14 + $0x3c0] ss:$8 sps:$4 sm:$0xff]   ;;  %v2670_v58 = vld [vmem:[%s2913_s14 + $0x1d4] ss:$8 sps:$4 sm:$0xff]  }
  0x5c   : > { %1714 = vmatprep.subr.bf16.mxu0 %v2574_v59  ;;  %v2673_v59 = vld [vmem:[%s2913_s14 + $0x3d4] ss:$8 sps:$4 sm:$0xff]  }
  0x5e   : > { %1629 = vmatpush1.bf16.msra.mxu1 %v2576_v60  ;;  %v2668_v60 = vld [vmem:[%s2913_s14 + $0x1d0] ss:$8 sps:$4 sm:$0xff]  }
  0x5f   : > { %1715 = vmatpush1.bf16.msra.mxu0 %v2577_v61  ;;  %1630 = vmatprep.subr.bf16.mxu1 %v2578_v62  ;;  %v2671_v61 = vld [vmem:[%s2913_s14 + $0x3d0] ss:$8 sps:$4 sm:$0xff]   ;;  %v2676_v62 = vld [vmem:[%s2913_s14 + $0x1e4] ss:$8 sps:$4 sm:$0xff]  }
  0x60   : > { %1716 = vmatprep.subr.bf16.mxu0 %v2580_v63  ;;  %v2679_v63 = vld [vmem:[%s2913_s14 + $0x3e4] ss:$8 sps:$4 sm:$0xff]  }
  0x62   : > { %1631 = vmatpush1.bf16.msra.mxu1 %v2582_v0  ;;  %v2674_v0 = vld [vmem:[%s2913_s14 + $0x1e0] ss:$8 sps:$4 sm:$0xff]  }
  0x63   : > { %1717 = vmatpush1.bf16.msra.mxu0 %v2583_v1  ;;  %1643 = vmatprep.subr.bf16.mxu1 %v2589_v2  ;;  %v2677_v1 = vld [vmem:[%s2913_s14 + $0x3e0] ss:$8 sps:$4 sm:$0xff]   ;;  %v2682_v2 = vld [vmem:[%s2913_s14 + $0x1f4] ss:$8 sps:$4 sm:$0xff]  }
  0x64   : > { %1729 = vmatprep.subr.bf16.mxu0 %v2595_v3  ;;  %v2685_v3 = vld [vmem:[%s2913_s14 + $0x3f4] ss:$8 sps:$4 sm:$0xff]  }
  0x65   : > { %1633 = vmatmul.mubr.bf16.vlgmr.msra.gmra.mrb[0].mxu1 %v2584_v4  ;;  %v2680_v4 = vld [vmem:[%s2913_s14 + $0x1f0] ss:$8 sps:$4 sm:$0xff]  }
  0x66   : > { %1719 = vmatmul.mubr.bf16.vlgmr.msra.gmra.mrb[0].mxu0 %v2590_v5  ;;  %1644 = vmatpush1.bf16.msra.mxu1 %v2587_v6  ;;  %v2683_v5 = vld [vmem:[%s2913_s14 + $0x3f0] ss:$8 sps:$4 sm:$0xff]   ;;  %v2694_v6 = vld [vmem:[%s2913_s14 + $0x404] ss:$8 sps:$4 sm:$0xff]  }
  0x67   : > { %1730 = vmatpush1.bf16.msra.mxu0 %v2593_v7  ;;  %1645 = vmatprep.subr.bf16.mxu1 %v2598_v8  ;;  %v2697_v7 = vld [vmem:[%s2913_s14 + $0x504] ss:$8 sps:$4 sm:$0xff]   ;;  %v2686_v8 = vld [vmem:[%s2906_s10 + $0x8] ss:$48 sps:$4 sm:$0xff]  }
  0x68   : > { %1731 = vmatprep.subr.bf16.mxu0 %v2601_v9  ;;  %1675 = vmatprep.mubr.bf16.mxu1 %v2688_v30  ;;  %v2689_v9 = vld [vmem:[%s2906_s10 + $0x18] ss:$48 sps:$4 sm:$0xff]   ;;  %v2724_v30 = vld [vmem:[%s2913_s14 + $0x454] ss:$8 sps:$4 sm:$0xff]  }
  0x69   : > { %1761 = vmatprep.mubr.bf16.mxu0 %v2691_v31  ;;  %v2727_v31 = vld [vmem:[%s2913_s14 + $0x554] ss:$8 sps:$4 sm:$0xff]  }
  0x6a   : > { %1646 = vmatpush1.bf16.msra.mxu1 %v2596_v10  ;;  %v2692_v10 = vld [vmem:[%s2913_s14 + $0x400] ss:$8 sps:$4 sm:$0xff]  }
  0x6b   : > { %1732 = vmatpush1.bf16.msra.mxu0 %v2599_v11  ;;  %1647 = vmatprep.subr.bf16.mxu1 %v2604_v12  ;;  %v2695_v11 = vld [vmem:[%s2913_s14 + $0x500] ss:$8 sps:$4 sm:$0xff]   ;;  %v2700_v12 = vld [vmem:[%s2913_s14 + $0x414] ss:$8 sps:$4 sm:$0xff]  }
  0x6c   : > { %1733 = vmatprep.subr.bf16.mxu0 %v2607_v13  ;;  %v2703_v13 = vld [vmem:[%s2913_s14 + $0x514] ss:$8 sps:$4 sm:$0xff]  }
  0x6e   : > { %1648 = vmatpush1.bf16.msra.mxu1 %v2602_v14  ;;  %v2770_v14 = vld [vmem:[%s2906_s10 + $0x2c] ss:$48 sps:$4 sm:$0xff]  }
  0x6f   : > { %1734 = vmatpush1.bf16.msra.mxu0 %v2605_v15  ;;  %1649 = vmatprep.subr.bf16.mxu1 %v2610_v16  ;;  %v2793_v15 = vld [vmem:[%s2906_s10 + $0x24] ss:$48 sps:$4 sm:$0xff]   ;;  %v2698_v16 = vld [vmem:[%s2913_s14 + $0x410] ss:$8 sps:$4 sm:$0xff]  }
  0x70   : > { %1735 = vmatprep.subr.bf16.mxu0 %v2613_v17  ;;  %v2701_v17 = vld [vmem:[%s2913_s14 + $0x510] ss:$8 sps:$4 sm:$0xff]  }
  0x72   : > { %1650 = vmatpush1.bf16.msra.mxu1 %v2608_v18  ;;  %v2706_v18 = vld [vmem:[%s2913_s14 + $0x424] ss:$8 sps:$4 sm:$0xff]  }
  0x73   : > { %1736 = vmatpush1.bf16.msra.mxu0 %v2611_v19  ;;  %1651 = vmatprep.subr.bf16.mxu1 %v2616_v20  ;;  %v2709_v19 = vld [vmem:[%s2913_s14 + $0x524] ss:$8 sps:$4 sm:$0xff]   ;;  %v2704_v20 = vld [vmem:[%s2913_s14 + $0x420] ss:$8 sps:$4 sm:$0xff]  }
  0x74   : > { %1737 = vmatprep.subr.bf16.mxu0 %v2619_v21  ;;  %v2707_v21 = vld [vmem:[%s2913_s14 + $0x520] ss:$8 sps:$4 sm:$0xff]  }
  0x76   : > { %1652 = vmatpush1.bf16.msra.mxu1 %v2614_v22  ;;  %v2712_v22 = vld [vmem:[%s2913_s14 + $0x434] ss:$8 sps:$4 sm:$0xff]  }
  0x77   : > { %1738 = vmatpush1.bf16.msra.mxu0 %v2617_v23  ;;  %1653 = vmatprep.subr.bf16.mxu1 %v2622_v24  ;;  %v2715_v23 = vld [vmem:[%s2913_s14 + $0x534] ss:$8 sps:$4 sm:$0xff]   ;;  %v2710_v24 = vld [vmem:[%s2913_s14 + $0x430] ss:$8 sps:$4 sm:$0xff]  }
  0x78   : > { %1739 = vmatprep.subr.bf16.mxu0 %v2625_v25  ;;  %v2713_v25 = vld [vmem:[%s2913_s14 + $0x530] ss:$8 sps:$4 sm:$0xff]  }
  0x7a   : > { %1654 = vmatpush1.bf16.msra.mxu1 %v2620_v26  ;;  %v2718_v26 = vld [vmem:[%s2913_s14 + $0x444] ss:$8 sps:$4 sm:$0xff]  }
  0x7b   : > { %1740 = vmatpush1.bf16.msra.mxu0 %v2623_v27  ;;  %1655 = vmatprep.subr.bf16.mxu1 %v2628_v28  ;;  %v2721_v27 = vld [vmem:[%s2913_s14 + $0x544] ss:$8 sps:$4 sm:$0xff]   ;;  %v2716_v28 = vld [vmem:[%s2913_s14 + $0x440] ss:$8 sps:$4 sm:$0xff]  }
  0x7c   : > { %1741 = vmatprep.subr.bf16.mxu0 %v2631_v29  ;;  %v2719_v29 = vld [vmem:[%s2913_s14 + $0x540] ss:$8 sps:$4 sm:$0xff]  }
  0x7e   : > { %1656 = vmatpush1.bf16.msra.mxu1 %v2626_v32  ;;  %v2722_v32 = vld [vmem:[%s2913_s14 + $0x450] ss:$8 sps:$4 sm:$0xff]  }
  0x7f   : > { %1742 = vmatpush1.bf16.msra.mxu0 %v2629_v33  ;;  %1657 = vmatprep.subr.bf16.mxu1 %v2634_v34  ;;  %v2725_v33 = vld [vmem:[%s2913_s14 + $0x550] ss:$8 sps:$4 sm:$0xff]   ;;  %v2730_v34 = vld [vmem:[%s2913_s14 + $0x464] ss:$8 sps:$4 sm:$0xff]  }
  0x80   : > { %1743 = vmatprep.subr.bf16.mxu0 %v2637_v35  ;;  %v2733_v35 = vld [vmem:[%s2913_s14 + $0x564] ss:$8 sps:$4 sm:$0xff]  }
  0x82   : > { %1658 = vmatpush1.bf16.msra.mxu1 %v2632_v36  ;;  %v2728_v36 = vld [vmem:[%s2913_s14 + $0x460] ss:$8 sps:$4 sm:$0xff]  }
  0x83   : > { %1744 = vmatpush1.bf16.msra.mxu0 %v2635_v37  ;;  %1659 = vmatprep.subr.bf16.mxu1 %v2640_v38  ;;  %v2731_v37 = vld [vmem:[%s2913_s14 + $0x560] ss:$8 sps:$4 sm:$0xff]   ;;  %v2736_v38 = vld [vmem:[%s2913_s14 + $0x474] ss:$8 sps:$4 sm:$0xff]  }
  0x84   : > { %1745 = vmatprep.subr.bf16.mxu0 %v2643_v39  ;;  %v2739_v39 = vld [vmem:[%s2913_s14 + $0x574] ss:$8 sps:$4 sm:$0xff]  }
  0x86   : > { %1660 = vmatpush1.bf16.msra.mxu1 %v2638_v40  ;;  %v2734_v40 = vld [vmem:[%s2913_s14 + $0x470] ss:$8 sps:$4 sm:$0xff]  }
  0x87   : > { %1746 = vmatpush1.bf16.msra.mxu0 %v2641_v41  ;;  %1661 = vmatprep.subr.bf16.mxu1 %v2646_v42  ;;  %v2737_v41 = vld [vmem:[%s2913_s14 + $0x570] ss:$8 sps:$4 sm:$0xff]   ;;  %v2742_v42 = vld [vmem:[%s2913_s14 + $0x484] ss:$8 sps:$4 sm:$0xff]  }
  0x88   : > { %1747 = vmatprep.subr.bf16.mxu0 %v2649_v43  ;;  %v2745_v43 = vld [vmem:[%s2913_s14 + $0x584] ss:$8 sps:$4 sm:$0xff]  }
  0x8a   : > { %1662 = vmatpush1.bf16.msra.mxu1 %v2644_v44  ;;  %v2740_v44 = vld [vmem:[%s2913_s14 + $0x480] ss:$8 sps:$4 sm:$0xff]  }
  0x8b   : > { %1748 = vmatpush1.bf16.msra.mxu0 %v2647_v45  ;;  %1663 = vmatprep.subr.bf16.mxu1 %v2652_v46  ;;  %v2743_v45 = vld [vmem:[%s2913_s14 + $0x580] ss:$8 sps:$4 sm:$0xff]   ;;  %v2748_v46 = vld [vmem:[%s2913_s14 + $0x494] ss:$8 sps:$4 sm:$0xff]  }
  0x8c   : > { %1749 = vmatprep.subr.bf16.mxu0 %v2655_v47  ;;  %v2751_v47 = vld [vmem:[%s2913_s14 + $0x594] ss:$8 sps:$4 sm:$0xff]  }
  0x8e   : > { %1664 = vmatpush1.bf16.msra.mxu1 %v2650_v48  ;;  %v2746_v48 = vld [vmem:[%s2913_s14 + $0x490] ss:$8 sps:$4 sm:$0xff]  }
  0x8f   : > { %1750 = vmatpush1.bf16.msra.mxu0 %v2653_v49  ;;  %1665 = vmatprep.subr.bf16.mxu1 %v2658_v50  ;;  %v2749_v49 = vld [vmem:[%s2913_s14 + $0x590] ss:$8 sps:$4 sm:$0xff]   ;;  %v2754_v50 = vld [vmem:[%s2913_s14 + $0x4a4] ss:$8 sps:$4 sm:$0xff]  }
  0x90   : > { %1751 = vmatprep.subr.bf16.mxu0 %v2661_v51  ;;  %v2757_v51 = vld [vmem:[%s2913_s14 + $0x5a4] ss:$8 sps:$4 sm:$0xff]  }
  0x92   : > { %1666 = vmatpush1.bf16.msra.mxu1 %v2656_v52  ;;  %v2752_v52 = vld [vmem:[%s2913_s14 + $0x4a0] ss:$8 sps:$4 sm:$0xff]  }
  0x93   : > { %1752 = vmatpush1.bf16.msra.mxu0 %v2659_v53  ;;  %1667 = vmatprep.subr.bf16.mxu1 %v2664_v54  ;;  %v2755_v53 = vld [vmem:[%s2913_s14 + $0x5a0] ss:$8 sps:$4 sm:$0xff]   ;;  %v2760_v54 = vld [vmem:[%s2913_s14 + $0x4b4] ss:$8 sps:$4 sm:$0xff]  }
  0x94   : > { %1753 = vmatprep.subr.bf16.mxu0 %v2667_v55  ;;  %v2763_v55 = vld [vmem:[%s2913_s14 + $0x5b4] ss:$8 sps:$4 sm:$0xff]  }
  0x96   : > { %1668 = vmatpush1.bf16.msra.mxu1 %v2662_v56  ;;  %v2758_v56 = vld [vmem:[%s2913_s14 + $0x4b0] ss:$8 sps:$4 sm:$0xff]  }
  0x97   : > { %1754 = vmatpush1.bf16.msra.mxu0 %v2665_v57  ;;  %1669 = vmatprep.subr.bf16.mxu1 %v2670_v58  ;;  %v2761_v57 = vld [vmem:[%s2913_s14 + $0x5b0] ss:$8 sps:$4 sm:$0xff]   ;;  %v2766_v58 = vld [vmem:[%s2913_s14 + $0x4c4] ss:$8 sps:$4 sm:$0xff]  }
  0x98   : > { %1755 = vmatprep.subr.bf16.mxu0 %v2673_v59  ;;  %v2769_v59 = vld [vmem:[%s2913_s14 + $0x5c4] ss:$8 sps:$4 sm:$0xff]  }
  0x9a   : > { %1670 = vmatpush1.bf16.msra.mxu1 %v2668_v60  ;;  %v2764_v60 = vld [vmem:[%s2913_s14 + $0x4c0] ss:$8 sps:$4 sm:$0xff]  }
  0x9b   : > { %1756 = vmatpush1.bf16.msra.mxu0 %v2671_v61  ;;  %1671 = vmatprep.subr.bf16.mxu1 %v2676_v62  ;;  %v2767_v61 = vld [vmem:[%s2913_s14 + $0x5c0] ss:$8 sps:$4 sm:$0xff]   ;;  %v2774_v62 = vld [vmem:[%s2913_s14 + $0x4d4] ss:$8 sps:$4 sm:$0xff]  }
  0x9c   : > { %1757 = vmatprep.subr.bf16.mxu0 %v2679_v63  ;;  %v2778_v63 = vld [vmem:[%s3049_s19 + $0x4] ss:$8 sps:$4 sm:$0xff]  }
  0x9e   : > { %1672 = vmatpush1.bf16.msra.mxu1 %v2674_v0  ;;  %v2775_v0 = vld [vmem:[%s2906_s10 + $0x28] ss:$48 sps:$4 sm:$0xff]  }
  0x9f   : > { %1758 = vmatpush1.bf16.msra.mxu0 %v2677_v1  ;;  %1673 = vmatprep.subr.bf16.mxu1 %v2682_v2  ;;  %v2772_v1 = vld [vmem:[%s2913_s14 + $0x4d0] ss:$8 sps:$4 sm:$0xff]   ;;  %v2776_v2 = vld [vmem:[%s3049_s19] ss:$8 sps:$4 sm:$0xff]  }
  0xa0   : > { %1759 = vmatprep.subr.bf16.mxu0 %v2685_v3  ;;  %v2781_v3 = vld [vmem:[%s2913_s14 + $0x4e4] ss:$8 sps:$4 sm:$0xff]  }
  0xa2   : > { %1674 = vmatpush1.bf16.msra.mxu1 %v2680_v4  ;;  %v2784_v4 = vld [vmem:[%s3049_s19 + $0x14] ss:$8 sps:$4 sm:$0xff]  }
  0xa3   : > { %1760 = vmatpush1.bf16.msra.mxu0 %v2683_v5  ;;  %1815 = vmatprep.subr.bf16.mxu1 %v2697_v7  ;;  %v2779_v5 = vld [vmem:[%s2913_s14 + $0x4e0] ss:$8 sps:$4 sm:$0xff]   ;;  %v2787_v7 = vld [vmem:[%s2913_s14 + $0x4f4] ss:$8 sps:$4 sm:$0xff]  }
  0xa4   : > { %1772 = vmatprep.subr.bf16.mxu0 %v2694_v6  ;;  %v2782_v6 = vld [vmem:[%s3049_s19 + $0x10] ss:$8 sps:$4 sm:$0xff]  }
  0xa5   : > { %1676 = vmatmul.mubr.bf16.vlgmr.msra.gmra.mrb[0].mxu1 %v2686_v8  ;;  %v2790_v8 = vld [vmem:[%s3049_s19 + $0x24] ss:$8 sps:$4 sm:$0xff]  }
  0xa6   : > { %1762 = vmatmul.mubr.bf16.vlgmr.msra.gmra.mrb[0].mxu0 %v2689_v9  ;;  %1816 = vmatpush1.bf16.msra.mxu1 %v2695_v11  ;;  %v2837_v9 = vmov 0   ;;  %v2788_v11 = vld [vmem:[%s3049_s19 + $0x20] ss:$8 sps:$4 sm:$0xff]  }
  0xa7   : > { %1773 = vmatpush1.bf16.msra.mxu0 %v2692_v10  ;;  %1817 = vmatprep.subr.bf16.mxu1 %v2703_v13  ;;  %v2785_v10 = vld [vmem:[%s2913_s14 + $0x4f0] ss:$8 sps:$4 sm:$0xff]  }
  0xa8   : > { %1774 = vmatprep.subr.bf16.mxu0 %v2700_v12  ;;  %2413 = vmatprep.mubr.msk.bf16.mxu1 %vm1596_vm0, %v2770_v14  ;;  %v2796_v12 = vld [vmem:[%s3049_s19 + $0x34] ss:$8 sps:$4 sm:$0xff]   ;;  %v2791_v13 = vld [vmem:[%s2906_s10 + $0x20] ss:$48 sps:$4 sm:$0xff]  }
  0xa9   : > { %1804 = vmatprep.mubr.bf16.mxu0 %v2793_v15  ;;  %v2794_v14 = vld [vmem:[%s3049_s19 + $0x30] ss:$8 sps:$4 sm:$0xff]   ;;  %v2797_v15 = vld [vmem:[%s3068_s23] sm:$0xff]  }
  0xaa   : > { %1818 = vmatpush1.bf16.msra.mxu1 %v2701_v17 }
  0xab   : > { %1775 = vmatpush1.bf16.msra.mxu0 %v2698_v16  ;;  %1819 = vmatprep.subr.bf16.mxu1 %v2709_v19  ;;  %v2838_v16 = vmov 0.0  }
  0xac   : > { %1776 = vmatprep.subr.bf16.mxu0 %v2706_v18 }
  0xae   : > { %1820 = vmatpush1.bf16.msra.mxu1 %v2707_v21 }
  0xaf   : > { %1777 = vmatpush1.bf16.msra.mxu0 %v2704_v20  ;;  %1821 = vmatprep.subr.bf16.mxu1 %v2715_v23 }
  0xb0   : > { %1778 = vmatprep.subr.bf16.mxu0 %v2712_v22  ;;  %v1964_v22 = vlaneseq }
  0xb2   : > { %1822 = vmatpush1.bf16.msra.mxu1 %v2713_v25 }
  0xb3   : > { %1779 = vmatpush1.bf16.msra.mxu0 %v2710_v24  ;;  %1823 = vmatprep.subr.bf16.mxu1 %v2721_v27  ;;  %v603_v27 = vld [vmem:[%s374_s8] sm:$0xff] }
  0xb4   : > { %1780 = vmatprep.subr.bf16.mxu0 %v2718_v26  ;;  %v1965_v26 = vshrl.u32 %v1964_v22, 7 }
  0xb6   : > { %1824 = vmatpush1.bf16.msra.mxu1 %v2719_v29  ;;  %v604_v29 = vld [vmem:[%s374_s8 + $0x8] sm:$0xff]  ;;  %vm1973_vm5 = vcmp.lt.s32.totalorder %v1965_v26, 3 }
  0xb7   : > { %1781 = vmatpush1.bf16.msra.mxu0 %v2716_v28  ;;  %1825 = vmatprep.subr.bf16.mxu1 %v2727_v31  ;;  %v1968_v28 = vmul.u32 4, %v1965_v26 }
  0xb8   : > { %1782 = vmatprep.subr.bf16.mxu0 %v2724_v30  ;;  %v605_v30 = vld [vmem:[%s374_s8 + $0x10] sm:$0xff] }
  0xba   : > { %1826 = vmatpush1.bf16.msra.mxu1 %v2725_v33 }
  0xbb   : > { %1783 = vmatpush1.bf16.msra.mxu0 %v2722_v32  ;;  %1827 = vmatprep.subr.bf16.mxu1 %v2733_v35  ;;  %v606_v32 = vld [vmem:[%s374_s8 + $0x18] sm:$0xff]  ;;  %v1967_v35 = vand.u32 127, %v1964_v22 }
  0xbc   : > { %1784 = vmatprep.subr.bf16.mxu0 %v2730_v34 }
  0xbd   : > { %vm1969_vm2 = vcmp.ge.s32.totalorder %v1967_v35, %v1968_v28 }
  0xbe   : > { %1828 = vmatpush1.bf16.msra.mxu1 %v2731_v37 }
  0xbf   : > { %1785 = vmatpush1.bf16.msra.mxu0 %v2728_v36  ;;  %1829 = vmatprep.subr.bf16.mxu1 %v2739_v39  ;;  %v1970_v36 = vadd.s32 4, %v1968_v28 }
  0xc0   : > { %1786 = vmatprep.subr.bf16.mxu0 %v2736_v38 }
  0xc1   : > { %vm1971_vm3 = vcmp.lt.s32.totalorder %v1967_v35, %v1970_v36 }
  0xc2   : > { %1830 = vmatpush1.bf16.msra.mxu1 %v2737_v41  ;;  %vm1972_vm4 = vmand %vm1969_vm2, %vm1971_vm3 }
  0xc3   : > { %1787 = vmatpush1.bf16.msra.mxu0 %v2734_v40  ;;  %1831 = vmatprep.subr.bf16.mxu1 %v2745_v43  ;;  %vm1974_vm6 = vmand %vm1972_vm4, %vm1973_vm5 }
  0xc4   : > { %1788 = vmatprep.subr.bf16.mxu0 %v2742_v42 }
  0xc6   : > { %1832 = vmatpush1.bf16.msra.mxu1 %v2743_v45 }
  0xc7   : > { %1789 = vmatpush1.bf16.msra.mxu0 %v2740_v44  ;;  %1833 = vmatprep.subr.bf16.mxu1 %v2751_v47 }
  0xc8   : > { %1790 = vmatprep.subr.bf16.mxu0 %v2748_v46 }
  0xca   : > { %1834 = vmatpush1.bf16.msra.mxu1 %v2749_v49 }
  0xcb   : > { %1791 = vmatpush1.bf16.msra.mxu0 %v2746_v48  ;;  %1835 = vmatprep.subr.bf16.mxu1 %v2757_v51 }
  0xcc   : > { %1792 = vmatprep.subr.bf16.mxu0 %v2754_v50 }
  0xce   : > { %1836 = vmatpush1.bf16.msra.mxu1 %v2755_v53 }
  0xcf   : > { %1793 = vmatpush1.bf16.msra.mxu0 %v2752_v52  ;;  %1837 = vmatprep.subr.bf16.mxu1 %v2763_v55 }
  0xd0   : > { %1794 = vmatprep.subr.bf16.mxu0 %v2760_v54 }
  0xd2   : > { %1838 = vmatpush1.bf16.msra.mxu1 %v2761_v57 }
  0xd3   : > { %1795 = vmatpush1.bf16.msra.mxu0 %v2758_v56  ;;  %1839 = vmatprep.subr.bf16.mxu1 %v2769_v59 }
  0xd4   : > { %1796 = vmatprep.subr.bf16.mxu0 %v2766_v58 }
  0xd6   : > { %1840 = vmatpush1.bf16.msra.mxu1 %v2767_v61 }
  0xd7   : > { %1797 = vmatpush1.bf16.msra.mxu0 %v2764_v60  ;;  %1917 = vmatprep.subr.bf16.mxu1 %v2778_v63  ;;  %v1975_v60 = vsel %vm1974_vm6, 1.0, %v2838_v16 }
  0xd8   : > { %1798 = vmatprep.subr.bf16.mxu0 %v2774_v62 }
  0xd9   : > { %1848 = vmatmul.mubr.bf16.vlgmr.msra.gmra.mrb[4].mxu1 %v2775_v0 }
  0xda   : > { %1918 = vmatpush1.bf16.msra.mxu1 %v2776_v2  ;;  %1949 = vmatprep.mubr.bf16.mxu1 %v2837_v9 }
  0xdb   : > { %1799 = vmatpush1.bf16.msra.mxu0 %v2772_v1  ;;  %1919 = vmatprep.subr.bf16.mxu1 %v2784_v4 }
  0xdc   : > { %1800 = vmatprep.subr.bf16.mxu0 %v2781_v3 }
  0xde   : > { %1920 = vmatpush1.bf16.msra.mxu1 %v2782_v6 }
  0xdf   : > { %1801 = vmatpush1.bf16.msra.mxu0 %v2779_v5  ;;  %1921 = vmatprep.subr.bf16.mxu1 %v2790_v8 }
  0xe0   : > { %1802 = vmatprep.subr.bf16.mxu0 %v2787_v7 }
  0xe2   : > { %1922 = vmatpush1.bf16.msra.mxu1 %v2788_v11 }
  0xe3   : > { %1803 = vmatpush1.bf16.msra.mxu0 %v2785_v10  ;;  %1923 = vmatprep.subr.bf16.mxu1 %v2796_v12 }
  0xe6   : > { %1805 = vmatmul.mubr.bf16.vlgmr.msra.gmra.mrb[0].mxu0 %v2791_v13  ;;  %1924 = vmatpush1.bf16.msra.mxu1 %v2794_v14 }
  0xe7   : > { %2044 = vmatprep.mubr.f32.mxu0 %v2838_v16 }
  0xe9   : > { %2423 = vmatmul.mubr.msk.bf16.vlgmr.msra.gmra.mrb[8].mxu1 %vm1913_vm1, %v2797_v15 }
 0x178   : > { %v1677_v17 = vpop.f32.mrb[0].mxu1 }
 0x179   : > { %v1679_v18 = vpop.f32.mrb[1].mxu1  ;;  %v2435_v31 = vadd.f32 %v1677_v17, %v603_v27 }
 0x17a   : > { %v1681_v19 = vpop.f32.mrb[2].mxu1  ;;  %v2438_v33 = vadd.f32 %v1679_v18, %v604_v29 }
 0x17b   : > { %v1683_v20 = vpop.f32.mrb[3].mxu1  ;;  %v2441_v37 = vadd.f32 %v1681_v19, %v605_v30 }
 0x17c   : > { %v2444_v40 = vadd.f32 %v1683_v20, %v606_v32 }
 0x1ac   : > { %v1849_v21 = vpop.f32.mrb[4].mxu1 }
 0x1ad   : > { %v1851_v23 = vpop.f32.mrb[5].mxu1 }
 0x1ae   : > { %v1853_v24 = vpop.f32.mrb[6].mxu1 }
 0x1af   : > { %v1855_v25 = vpop.f32.mrb[7].mxu1 }
 0x1b9   : > { %v1806_v34 = vpop.f32.mrb[0].mxu0 }
 0x1ba   : > { %v2436_v38 = vadd.f32 %v2435_v31, %v1806_v34  ;;  %v1808_v39 = vpop.f32.mrb[1].mxu0 }
 0x1bb   : > { %v2439_v41 = vadd.f32 %v2438_v33, %v1808_v39  ;;  %v1810_v42 = vpop.f32.mrb[2].mxu0 }
 0x1bc   : > { %v2442_v43 = vadd.f32 %v2441_v37, %v1810_v42  ;;  %v1812_v44 = vpop.f32.mrb[3].mxu0  ;;  %v2437_v45 = vadd.f32 %v2436_v38, %v1849_v21  ;;  %v1951_v47 = vpop.f32.mrb[8].mxu1 }
 0x1bd   : > { %v2445_v46 = vadd.f32 %v2444_v40, %v1812_v44  ;;  %v2440_v48 = vadd.f32 %v2439_v41, %v1851_v23  ;;  %v1953_v50 = vpop.f32.mrb[9].mxu1 }
 0x1be   : > { %v1960_v49 = vmul.f32 %v2437_v45, %v1951_v47  ;;  %v2443_v51 = vadd.f32 %v2442_v43, %v1853_v24  ;;  %v1955_v53 = vpop.f32.mrb[10].mxu1 }
 0x1bf   : > { %v1961_v52 = vmul.f32 %v2440_v48, %v1953_v50  ;;  %v2446_v54 = vadd.f32 %v2445_v46, %v1855_v25  ;;  %v1957_v56 = vpop.f32.mrb[11].mxu1 }
 0x1c0   : > { %v1962_v55 = vmul.f32 %v2443_v51, %v1955_v53 }
 0x1c1   : > { %v1963_v57 = vmul.f32 %v2446_v54, %v1957_v56 }
 0x1c2   : > { %v2433_v58 = vpack.c.bf16 %v1962_v55, %v1960_v49 }
 0x1c3   : > { %v2431_v59 = vpack.c.bf16 %v1963_v57, %v1961_v52 }
 0x1c5   : > { %2432 = vmatprep.subr.bf16.mxu0 %v2431_v59 }
 0x1c6   : > { %2434 = vmatpush1.bf16.msra.mxu0 %v2433_v58 }
 0x1c9   : > { %2424 = vmatmul.mubr.msk.f32.vlgmr.msra.gmra.mrb[4].mxu0 %vm1976_vm7, %v1975_v60 }
 0x29c   : > { %v2046_v61 = vpop.f32.mrb[4].mxu0 }
 0x29d   : > { %2051 = vst [vmem:[%s402_s11] sm:$0xff] %v2046_v61  ;;  %v2048_v62 = vpop.f32.mrb[5].mxu0 }
 0x29e   : > { %2052 = vst [vmem:[%s402_s11 + $0x8] sm:$0xff] %v2048_v62 }
 0x29f PF: > { %s22_s28 = sadd.s32 1, %s2834_s28   ;;  %s3156_s26 = smov %s2830_s27 }
 0x2a0   : > { %p19_p13 = scmp.ge.s32.totalorder %s22_s28, 4   ;;  %s3157_s27 = smov %s3159_s0 }
 0x2a2   :  { %21 = sbr.rel (!%p19_p13) target bundleno = 17 (0x11), region = 82 }

</bundles_post_ra>
